<compile_context>
chip_gen: v6e
topology: v6e:2x2x1
jax: 0.10.0
libtpu: 0.0.40
codegen_flags: <defaults>
</compile_context>

<pallas_src>
import jax
import jax.numpy as jnp
from jax.experimental import pallas as pl
from jax.experimental.pallas import tpu as pltpu


def _round_up(a, m):
    return ((a + m - 1) // m) * m


def _node_mlp_kernel(x_ref, e_ref, w1x_ref, w1e_ref, b1_ref, w2_ref, b2_ref,
                     g_ref, beta_ref, o_ref):
    # ---- Linear 1, split over the [x | recv] feature groups (concat-free). ----
    # bf16 operands, f32 MXU accumulation; b1_ref already contains u @ W1_u.
    xb = x_ref[...].astype(jnp.bfloat16)
    eb = e_ref[...].astype(jnp.bfloat16)
    h = jnp.dot(xb, w1x_ref[...], preferred_element_type=jnp.float32)
    h = h + jnp.dot(eb, w1e_ref[...], preferred_element_type=jnp.float32)
    h = jnp.maximum(h + b1_ref[...], 0.0)

    # ---- Linear 2 + bias + ReLU (activate_final=True). ----
    y = jnp.dot(h.astype(jnp.bfloat16), w2_ref[...],
                preferred_element_type=jnp.float32)
    y = jnp.maximum(y + b2_ref[...], 0.0)

    # ---- LayerNorm over the last dim (exactly n_out lanes, eps = 1e-5). ----
    n_out = y.shape[-1]
    inv_n = 1.0 / n_out
    mean = jnp.sum(y, axis=-1, keepdims=True) * inv_n
    yc = y - mean
    var = jnp.sum(yc * yc, axis=-1, keepdims=True) * inv_n
    y_norm = yc * jax.lax.rsqrt(var + 1e-5)
    o_ref[...] = (y_norm * g_ref[...] + beta_ref[...]).astype(o_ref.dtype)


def node_mlp_pallas(x, recv, w1x, w1e, b1_eff, w2, b2, gamma, beta, *,
                    tile_nodes=1024):
    """Fused node MLP: LayerNorm(ReLU(ReLU(x@W1x + recv@W1e + b1_eff)@W2 + b2)).

    x:      [n_nodes, Fx]  f32   recv: [n_nodes, Fe] f32
    w1x:    [Fx, L] bf16         w1e:  [Fe, L] bf16
    b1_eff: [1, L]  f32 (includes the folded global contribution)
    w2:     [L, Fo] bf16         b2/gamma/beta: [1, Fo] f32
    Returns [n_nodes, Fo] bf16.
    """
    n_nodes, fx = x.shape
    fe = recv.shape[1]
    latent = w1x.shape[1]
    n_out = w2.shape[1]

    # Node tile: big (amortize per-step overhead), multiple of 16 (bf16 sublane
    # packing of the output block), rebalanced so multi-tile graphs split into
    # roughly equal "parallel" steps (>= 2 steps keeps both v7x TCs busy).
    tile = min(tile_nodes, _round_up(n_nodes, 16))
    n_tiles = pl.cdiv(n_nodes, tile)
    tile = min(tile, _round_up(pl.cdiv(n_nodes, n_tiles), 16))
    grid = (pl.cdiv(n_nodes, tile),)

    return pl.pallas_call(
        _node_mlp_kernel,
        out_shape=jax.ShapeDtypeStruct((n_nodes, n_out), jnp.bfloat16),
        grid_spec=pltpu.PrefetchScalarGridSpec(
            num_scalar_prefetch=0,
            grid=grid,
            in_specs=[
                # Blocks span the full feature dim -> contiguous DMA, (8,128) rule
                # satisfied via "equals full array dim" on the last axis.
                pl.BlockSpec((tile, fx), lambda i: (i, 0)),       # node feats tile
                pl.BlockSpec((tile, fe), lambda i: (i, 0)),       # recv-agg tile
                # Grid-invariant operands: constant index_map -> no per-step DMA.
                pl.BlockSpec((fx, latent), lambda i: (0, 0)),     # W1 (x rows)
                pl.BlockSpec((fe, latent), lambda i: (0, 0)),     # W1 (recv rows)
                pl.BlockSpec((1, latent), lambda i: (0, 0)),      # b1_eff
                pl.BlockSpec((latent, n_out), lambda i: (0, 0)),  # W2
                pl.BlockSpec((1, n_out), lambda i: (0, 0)),       # b2
                pl.BlockSpec((1, n_out), lambda i: (0, 0)),       # LN gamma
                pl.BlockSpec((1, n_out), lambda i: (0, 0)),       # LN beta
            ],
            out_specs=pl.BlockSpec((tile, n_out), lambda i: (i, 0)),
        ),
        compiler_params=pltpu.CompilerParams(
            dimension_semantics=("parallel",),
            vmem_limit_bytes=32 * 1024 * 1024,   # safe on v7x's 64 MiB VMEM
        ),
    )(x, recv, w1x, w1e, b1_eff, w2, b2, gamma, beta)


def node_model_forward(x, edge_index, edge_attr, u, params, *, tile_nodes=1024):
    """NodeModel.forward (senders_turned_off=True, single graph: u is [1, Fg]).

    Returns bf16 node features [n_nodes, n_out]; downstream consumers take the
    bf16 result directly (matmuls in this stack are bf16-operand anyway).
    """
    assert u.shape[0] == 1, "batch numbers should be provided."
    w1, b1, w2, b2, gamma, beta = params
    n_nodes, fx = x.shape
    fe = edge_attr.shape[1]

    # TODO(synk): the edge->node scatter_sum is a data-dependent scatter with no
    # clean dense-BlockSpec Pallas equivalent; it runs as an XLA scatter-add.
    col = edge_index[1]
    recv = jnp.zeros((n_nodes, fe), x.dtype).at[col].add(edge_attr)

    # Split W1 by feature group ([x | recv | u] concat order) and fold the
    # node-invariant global term into the first-layer bias.
    w1x = w1[:fx].astype(jnp.bfloat16)
    w1e = w1[fx:fx + fe].astype(jnp.bfloat16)
    w1u = w1[fx + fe:].astype(jnp.bfloat16)
    b1_eff = (b1.astype(jnp.float32)
              + jnp.dot(u.astype(jnp.bfloat16), w1u,
                        preferred_element_type=jnp.float32)[0]).reshape(1, -1)

    return node_mlp_pallas(
        x, recv, w1x, w1e, b1_eff,
        w2.astype(jnp.bfloat16),
        b2.astype(jnp.float32).reshape(1, -1),
        gamma.astype(jnp.float32).reshape(1, -1),
        beta.astype(jnp.float32).reshape(1, -1),
        tile_nodes=tile_nodes,
    )


def reference(x, edge_index, edge_attr, u, params):
    """Pure-JAX reference mirroring the module (bf16 matmul operands, f32 acc)."""
    col = edge_index[1]
    n_nodes = x.shape[0]
    recv = jnp.zeros((n_nodes, edge_attr.shape[1]), x.dtype).at[col].add(edge_attr)
    g = jnp.broadcast_to(u, (n_nodes, u.shape[-1]))
    feats = jnp.concatenate([x, recv, g], axis=1)
    w1, b1, w2, b2, gamma, beta = params
    h = jnp.maximum(
        jnp.dot(feats.astype(jnp.bfloat16), w1.astype(jnp.bfloat16),
                preferred_element_type=jnp.float32) + b1, 0.0)
    y = jnp.maximum(
        jnp.dot(h.astype(jnp.bfloat16), w2.astype(jnp.bfloat16),
                preferred_element_type=jnp.float32) + b2, 0.0)
    mean = jnp.mean(y, axis=-1, keepdims=True)
    var = jnp.mean((y - mean) ** 2, axis=-1, keepdims=True)
    return (y - mean) * jax.lax.rsqrt(var + 1e-5) * gamma + beta


if __name__ == "__main__":
    # Small shapes consistent with the module: nodes, edges, node/edge/global feats.
    n_nodes, n_edges = 20, 48
    n_node_feats_in, n_edge_feats, n_global_feats = 16, 8, 8
    latent_size, n_node_feats_out = 128, 32

    key = jax.random.PRNGKey(0)
    keys = jax.random.split(key, 9)
    x = jax.random.normal(keys[0], (n_nodes, n_node_feats_in), dtype=jnp.float32)
    edge_attr = jax.random.normal(keys[1], (n_edges, n_edge_feats), dtype=jnp.float32)
    row = jax.random.randint(keys[2], (n_edges,), 0, n_nodes)
    col = jax.random.randint(keys[3], (n_edges,), 0, n_nodes)
    edge_index = jnp.stack([row, col], axis=0)
    u = jax.random.normal(keys[4], (1, n_global_feats), dtype=jnp.float32)

    n_in_cat = n_node_feats_in + n_edge_feats + n_global_feats  # senders off: x|recv|u
    w1 = jax.random.normal(keys[5], (n_in_cat, latent_size), dtype=jnp.float32) * 0.1
    b1 = jax.random.normal(keys[6], (latent_size,), dtype=jnp.float32) * 0.01
    w2 = jax.random.normal(keys[7], (latent_size, n_node_feats_out), dtype=jnp.float32) * 0.1
    b2 = jax.random.normal(keys[8], (n_node_feats_out,), dtype=jnp.float32) * 0.01
    gamma = jnp.ones((n_node_feats_out,), dtype=jnp.float32)   # LayerNorm default weight
    beta = jnp.zeros((n_node_feats_out,), dtype=jnp.float32)   # LayerNorm default bias
    params = (w1, b1, w2, b2, gamma, beta)

    out = node_model_forward(x, edge_index, edge_attr, u, params)
    out = jax.block_until_ready(out)

    ref = reference(x, edge_index, edge_attr, u, params)
    assert out.shape == (n_nodes, n_node_feats_out)
    assert out.dtype == jnp.bfloat16
    out_f32 = out.astype(jnp.float32)
    # bf16 output quantization (<= ~0.4% relative) + bf16-operand matmul paths.
    assert bool(jnp.allclose(out_f32, ref, atol=2e-2, rtol=2e-2)), \
        float(jnp.max(jnp.abs(out_f32 - ref)))

    print("KERNEL_OK")
</pallas_src>

<mosaic_0001>
module attributes {stable_mosaic.version = 11 : i64} {
  func.func @_node_mlp_kernel(%arg0: i32, %arg1: memref<32x16xf32, #tpu.memory_space<vmem>>, %arg2: memref<32x8xf32, #tpu.memory_space<vmem>>, %arg3: memref<16x128xbf16, #tpu.memory_space<vmem>>, %arg4: memref<8x128xbf16, #tpu.memory_space<vmem>>, %arg5: memref<1x128xf32, #tpu.memory_space<vmem>>, %arg6: memref<128x32xbf16, #tpu.memory_space<vmem>>, %arg7: memref<1x32xf32, #tpu.memory_space<vmem>>, %arg8: memref<1x32xf32, #tpu.memory_space<vmem>>, %arg9: memref<1x32xf32, #tpu.memory_space<vmem>>, %arg10: memref<32x32xbf16, #tpu.memory_space<vmem>>) attributes {dimension_semantics = [#tpu.dimension_semantics<parallel>], iteration_bounds = array<i64: 1>, scalar_prefetch = 0 : i64, scratch_operands = 0 : i64, tpu.core_type = #tpu.core_type<tc>, window_params = [{transform_indices = @transform_0, window_bounds = array<i64: 32, 16>}, {transform_indices = @transform_1, window_bounds = array<i64: 32, 8>}, {pipeline_mode = #tpu.pipeline_mode<synchronous>, transform_indices = @transform_2, window_bounds = array<i64: 16, 128>}, {pipeline_mode = #tpu.pipeline_mode<synchronous>, transform_indices = @transform_3, window_bounds = array<i64: 8, 128>}, {pipeline_mode = #tpu.pipeline_mode<synchronous>, transform_indices = @transform_4, window_bounds = array<i64: 1, 128>}, {pipeline_mode = #tpu.pipeline_mode<synchronous>, transform_indices = @transform_5, window_bounds = array<i64: 128, 32>}, {pipeline_mode = #tpu.pipeline_mode<synchronous>, transform_indices = @transform_6, window_bounds = array<i64: 1, 32>}, {pipeline_mode = #tpu.pipeline_mode<synchronous>, transform_indices = @transform_7, window_bounds = array<i64: 1, 32>}, {pipeline_mode = #tpu.pipeline_mode<synchronous>, transform_indices = @transform_8, window_bounds = array<i64: 1, 32>}, {transform_indices = @transform_9, window_bounds = array<i64: 32, 32>}]} {
    %c0 = arith.constant 0 : index
    %c0_0 = arith.constant 0 : index
    %0 = vector.load %arg1[%c0, %c0_0] : memref<32x16xf32, #tpu.memory_space<vmem>>, vector<32x16xf32>
    %1 = arith.truncf %0 : vector<32x16xf32> to vector<32x16xbf16>
    %c0_1 = arith.constant 0 : index
    %c0_2 = arith.constant 0 : index
    %2 = vector.load %arg2[%c0_1, %c0_2] : memref<32x8xf32, #tpu.memory_space<vmem>>, vector<32x8xf32>
    %3 = arith.truncf %2 : vector<32x8xf32> to vector<32x8xbf16>
    %c0_3 = arith.constant 0 : index
    %c0_4 = arith.constant 0 : index
    %4 = vector.load %arg3[%c0_3, %c0_4] : memref<16x128xbf16, #tpu.memory_space<vmem>>, vector<16x128xbf16>
    %cst = arith.constant dense<0.000000e+00> : vector<32x128xf32>
    %5 = tpu.matmul %1, %4, %cst {dimension_numbers = #tpu.dot_dimension_numbers<[1], [0], [0], [1], [0, 0, 1, 1], [], []>} : vector<32x16xbf16>, vector<16x128xbf16>, vector<32x128xf32> -> vector<32x128xf32>
    %c0_5 = arith.constant 0 : index
    %c0_6 = arith.constant 0 : index
    %6 = vector.load %arg4[%c0_5, %c0_6] : memref<8x128xbf16, #tpu.memory_space<vmem>>, vector<8x128xbf16>
    %cst_7 = arith.constant dense<0.000000e+00> : vector<32x128xf32>
    %7 = tpu.matmul %3, %6, %cst_7 {dimension_numbers = #tpu.dot_dimension_numbers<[1], [0], [0], [1], [0, 0, 1, 1], [], []>} : vector<32x8xbf16>, vector<8x128xbf16>, vector<32x128xf32> -> vector<32x128xf32>
    %8 = arith.addf %5, %7 : vector<32x128xf32>
    %c0_8 = arith.constant 0 : index
    %c0_9 = arith.constant 0 : index
    %9 = vector.load %arg5[%c0_8, %c0_9] : memref<1x128xf32, #tpu.memory_space<vmem>>, vector<1x128xf32>
    %10 = vector.broadcast %9 : vector<1x128xf32> to vector<32x128xf32>
    %11 = arith.addf %8, %10 : vector<32x128xf32>
    %cst_10 = arith.constant 0.000000e+00 : f32
    %12 = vector.broadcast %cst_10 : f32 to vector<32x128xf32>
    %13 = arith.maximumf %11, %12 : vector<32x128xf32>
    %14 = arith.truncf %13 : vector<32x128xf32> to vector<32x128xbf16>
    %c0_11 = arith.constant 0 : index
    %c0_12 = arith.constant 0 : index
    %15 = vector.load %arg6[%c0_11, %c0_12] : memref<128x32xbf16, #tpu.memory_space<vmem>>, vector<128x32xbf16>
    %cst_13 = arith.constant dense<0.000000e+00> : vector<32x32xf32>
    %16 = tpu.matmul %14, %15, %cst_13 {dimension_numbers = #tpu.dot_dimension_numbers<[1], [0], [0], [1], [0, 0, 1, 1], [], []>} : vector<32x128xbf16>, vector<128x32xbf16>, vector<32x32xf32> -> vector<32x32xf32>
    %c0_14 = arith.constant 0 : index
    %c0_15 = arith.constant 0 : index
    %17 = vector.load %arg7[%c0_14, %c0_15] : memref<1x32xf32, #tpu.memory_space<vmem>>, vector<1x32xf32>
    %18 = vector.broadcast %17 : vector<1x32xf32> to vector<32x32xf32>
    %19 = arith.addf %16, %18 : vector<32x32xf32>
    %cst_16 = arith.constant 0.000000e+00 : f32
    %20 = vector.broadcast %cst_16 : f32 to vector<32x32xf32>
    %21 = arith.maximumf %19, %20 : vector<32x32xf32>
    %cst_17 = arith.constant dense<0.000000e+00> : vector<32xf32>
    %22 = vector.multi_reduction <add>, %21, %cst_17 [1] : vector<32x32xf32> to vector<32xf32>
    %23 = vector.shape_cast %22 : vector<32xf32> to vector<32x1xf32>
    %cst_18 = arith.constant 3.125000e-02 : f32
    %24 = vector.broadcast %cst_18 : f32 to vector<32x1xf32>
    %25 = arith.mulf %23, %24 : vector<32x1xf32>
    %26 = vector.broadcast %25 : vector<32x1xf32> to vector<32x32xf32>
    %27 = arith.subf %21, %26 : vector<32x32xf32>
    %28 = arith.mulf %27, %27 : vector<32x32xf32>
    %cst_19 = arith.constant dense<0.000000e+00> : vector<32xf32>
    %29 = vector.multi_reduction <add>, %28, %cst_19 [1] : vector<32x32xf32> to vector<32xf32>
    %30 = vector.shape_cast %29 : vector<32xf32> to vector<32x1xf32>
    %cst_20 = arith.constant 3.125000e-02 : f32
    %31 = vector.broadcast %cst_20 : f32 to vector<32x1xf32>
    %32 = arith.mulf %30, %31 : vector<32x1xf32>
    %cst_21 = arith.constant 9.99999974E-6 : f32
    %33 = vector.broadcast %cst_21 : f32 to vector<32x1xf32>
    %34 = arith.addf %32, %33 : vector<32x1xf32>
    %35 = math.rsqrt %34 : vector<32x1xf32>
    %36 = vector.broadcast %35 : vector<32x1xf32> to vector<32x32xf32>
    %37 = arith.mulf %27, %36 : vector<32x32xf32>
    %c0_22 = arith.constant 0 : index
    %c0_23 = arith.constant 0 : index
    %38 = vector.load %arg8[%c0_22, %c0_23] : memref<1x32xf32, #tpu.memory_space<vmem>>, vector<1x32xf32>
    %39 = vector.broadcast %38 : vector<1x32xf32> to vector<32x32xf32>
    %40 = arith.mulf %37, %39 : vector<32x32xf32>
    %c0_24 = arith.constant 0 : index
    %c0_25 = arith.constant 0 : index
    %41 = vector.load %arg9[%c0_24, %c0_25] : memref<1x32xf32, #tpu.memory_space<vmem>>, vector<1x32xf32>
    %42 = vector.broadcast %41 : vector<1x32xf32> to vector<32x32xf32>
    %43 = arith.addf %40, %42 : vector<32x32xf32>
    %44 = arith.truncf %43 : vector<32x32xf32> to vector<32x32xbf16>
    %c0_26 = arith.constant 0 : index
    %c0_27 = arith.constant 0 : index
    %45 = vector.load %arg10[%c0_26, %c0_27] : memref<32x32xbf16, #tpu.memory_space<vmem>>, vector<32x32xbf16>
    tpu.vector_store %arg10[%c0_26, %c0_27], %44 {strides = array<i32>} : memref<32x32xbf16, #tpu.memory_space<vmem>>, vector<32x32xbf16>,
    return
  }
  func.func @transform_0(%arg0: i32) -> (i32, i32) {
    %c0_i32 = arith.constant 0 : i32
    %c0_i32_0 = arith.constant 0 : i32
    return %arg0, %c0_i32 : i32, i32
  }
  func.func @transform_1(%arg0: i32) -> (i32, i32) {
    %c0_i32 = arith.constant 0 : i32
    %c0_i32_0 = arith.constant 0 : i32
    return %arg0, %c0_i32 : i32, i32
  }
  func.func @transform_2(%arg0: i32) -> (i32, i32) {
    %c0_i32 = arith.constant 0 : i32
    %c0_i32_0 = arith.constant 0 : i32
    %c0_i32_1 = arith.constant 0 : i32
    return %c0_i32, %c0_i32_0 : i32, i32
  }
  func.func @transform_3(%arg0: i32) -> (i32, i32) {
    %c0_i32 = arith.constant 0 : i32
    %c0_i32_0 = arith.constant 0 : i32
    %c0_i32_1 = arith.constant 0 : i32
    return %c0_i32, %c0_i32_0 : i32, i32
  }
  func.func @transform_4(%arg0: i32) -> (i32, i32) {
    %c0_i32 = arith.constant 0 : i32
    %c0_i32_0 = arith.constant 0 : i32
    %c0_i32_1 = arith.constant 0 : i32
    return %c0_i32, %c0_i32_0 : i32, i32
  }
  func.func @transform_5(%arg0: i32) -> (i32, i32) {
    %c0_i32 = arith.constant 0 : i32
    %c0_i32_0 = arith.constant 0 : i32
    %c0_i32_1 = arith.constant 0 : i32
    return %c0_i32, %c0_i32_0 : i32, i32
  }
  func.func @transform_6(%arg0: i32) -> (i32, i32) {
    %c0_i32 = arith.constant 0 : i32
    %c0_i32_0 = arith.constant 0 : i32
    %c0_i32_1 = arith.constant 0 : i32
    return %c0_i32, %c0_i32_0 : i32, i32
  }
  func.func @transform_7(%arg0: i32) -> (i32, i32) {
    %c0_i32 = arith.constant 0 : i32
    %c0_i32_0 = arith.constant 0 : i32
    %c0_i32_1 = arith.constant 0 : i32
    return %c0_i32, %c0_i32_0 : i32, i32
  }
  func.func @transform_8(%arg0: i32) -> (i32, i32) {
    %c0_i32 = arith.constant 0 : i32
    %c0_i32_0 = arith.constant 0 : i32
    %c0_i32_1 = arith.constant 0 : i32
    return %c0_i32, %c0_i32_0 : i32, i32
  }
  func.func @transform_9(%arg0: i32) -> (i32, i32) {
    %c0_i32 = arith.constant 0 : i32
    %c0_i32_0 = arith.constant 0 : i32
    return %arg0, %c0_i32 : i32, i32
  }
}

</mosaic_0001>

<bundles_post_ra>
// kernel: tpu_custom_call.1
= control target key start
LH: loop header
LB: loop body
LE: loop exit
PB: predicated region body
PF: predicated region fallthrough
CT: control target
= control target key end

     0   :  { %14 = vsyncpa [#allocation3], 0  ;;  %vm56_vm0 = vcmask 1043456   ;;  %vm49_vm1 = vcmask 64512   ;;  %vm115_vm2 = vcmask 130048   ;;  %vm312_vm3 = vcmask 261120   ;;  %s676_s0 = inlined_call_operand.vmem [shape: f32[20,16], index: 0, kind: input, shape index: {}]   ;;  %s677_s1 = inlined_call_operand.vmem [shape: f32[20,8], index: 1, kind: input, shape index: {}]   ;;  %s678_s2 = inlined_call_operand.vmem [shape: bf16[16,128], index: 2, kind: input, shape index: {}]   ;;  %s679_s3 = inlined_call_operand.vmem [shape: bf16[8,128], index: 3, kind: input, shape index: {}]   ;;  %s680_s4 = inlined_call_operand.vmem [shape: f32[1,128], index: 4, kind: input, shape index: {}]   ;;  %s681_s5 = inlined_call_operand.vmem [shape: bf16[128,32], index: 5, kind: input, shape index: {}]   ;;  %s682_s6 = inlined_call_operand.vmem [shape: f32[1,32], index: 6, kind: input, shape index: {}]   ;;  %s683_s7 = inlined_call_operand.vmem [shape: f32[1,32], index: 7, kind: input, shape index: {}]   ;;  %s684_s8 = inlined_call_operand.vmem [shape: f32[1,32], index: 8, kind: input, shape index: {}]   ;;  %s685_s9 = inlined_call_operand.hbm [shape: bf16[20,32], index: 9, kind: output, shape index: {}]  }
   0x1   :  { %v48_v0 = vld [vmem:[%s679_s3] sm:$0xf]  ;;  %v41_v3 = vld [vmem:[%s677_s1 + $0x8] sm:$0xff]  ;;  %v42_v4 = vld [vmem:[%s677_s1 + $0x10] sm:$0xff]  ;;  %vm403_vm4 = vcmask 257024  }
   0x2   :  { %v40_v1 = vld [vmem:[%s677_s1] sm:$0xff]  ;;  %497 = vmatprep.subr.msk.bf16.mxu1 %vm56_vm0, %v48_v0  ;;  %v58_v2 = vsel %vm56_vm0, %v48_v0, 0  ;;  %v43_v5 = vld [vmem:[%s677_s1 + $0x18] sm:$0xff]  ;;  %v35_v10 = vld [vmem:[%s676_s0 + $0x8] sm:$0xff] }
   0x3   :  { %466 = vmatpush3.bf16.msra.mxu1 %v58_v2  ;;  %v44_v6 = vpack.c.bf16 %v41_v3, %v40_v1  ;;  %v45_v7 = vpack.c.bf16 %v43_v5, %v42_v4  ;;  %v501_v8 = vld [vmem:[%s678_s2] sm:$0xff]   ;;  %v36_v12 = vld [vmem:[%s676_s0 + $0x10] sm:$0xff]  ;;  %v37_v13 = vld [vmem:[%s676_s0 + $0x18] sm:$0xff] }
   0x4   :  { %v34_v9 = vld [vmem:[%s676_s0] sm:$0xff]  ;;  %471 = vmatprep.subr.bf16.mxu1 %v501_v8  ;;  %v502_v14 = vld [vmem:[%s681_s5 + $0x38] sm:$0xff]   ;;  %v503_v15 = vld [vmem:[%s681_s5 + $0x30] sm:$0xff]   ;;  %v39_v16 = vpack.c.bf16 %v37_v13, %v36_v12 }
   0x5   :  { %467 = vmatprep.mubr.msk.bf16.mxu1 %vm49_vm1, %v44_v6  ;;  %v38_v11 = vpack.c.bf16 %v35_v10, %v34_v9  ;;  %477 = vmatprep.subr.bf16.mxu0 %v502_v14  ;;  %v504_v17 = vld [vmem:[%s681_s5 + $0x28] sm:$0xff]   ;;  %v505_v18 = vld [vmem:[%s681_s5 + $0x20] sm:$0xff]   ;;  %v506_v19 = vld [vmem:[%s681_s5 + $0x18] sm:$0xff]  }
   0x6   :  { %468 = vmatmul.mubr.msk.bf16.vlgmr.msra.gmra.mxu1 %vm49_vm1, %v45_v7  ;;  %478 = vmatpush3.bf16.msra.mxu0 %v502_v14  ;;  %v507_v20 = vld [vmem:[%s681_s5 + $0x10] sm:$0xff]   ;;  %v508_v21 = vld [vmem:[%s681_s5 + $0x8] sm:$0xff]   ;;  %v509_v22 = vld [vmem:[%s681_s5] sm:$0xff]  }
   0x7   :  { %472 = vmatpush3.bf16.msra.mxu1 %v501_v8  ;;  %473 = vmatprep.mubr.msk.bf16.mxu1 %vm115_vm2, %v38_v11  ;;  %v429_v32 = vld [vmem:[%s680_s4] ss:$0 sm:$0xff] }
   0x8   :  { %479 = vmatprep.subr.bf16.mxu0 %v503_v15  ;;  %v430_v46 = vld [vmem:[%s682_s6] ss:$0 sm:$0xff] }
   0xa   :  { %480 = vmatpush3.bf16.msra.mxu0 %v503_v15 }
   0xb   :  { %481 = vmatprep.subr.bf16.mxu0 %v504_v17 }
   0xe   :  { %474 = vmatmul.mubr.msk.bf16.vlgmr.msra.gmra.mxu1 %vm115_vm2, %v39_v16  ;;  %482 = vmatpush3.bf16.msra.mxu0 %v504_v17 }
   0xf   :  { %483 = vmatprep.subr.bf16.mxu0 %v505_v18 }
  0x12   :  { %484 = vmatpush3.bf16.msra.mxu0 %v505_v18 }
  0x13   :  { %485 = vmatprep.subr.bf16.mxu0 %v506_v19 }
  0x16   :  { %486 = vmatpush3.bf16.msra.mxu0 %v506_v19 }
  0x17   :  { %487 = vmatprep.subr.bf16.mxu0 %v507_v20 }
  0x1a   :  { %488 = vmatpush3.bf16.msra.mxu0 %v507_v20 }
  0x1b   :  { %489 = vmatprep.subr.bf16.mxu0 %v508_v21 }
  0x1e   :  { %490 = vmatpush3.bf16.msra.mxu0 %v508_v21 }
  0x1f   :  { %491 = vmatprep.subr.bf16.mxu0 %v509_v22 }
  0x22   :  { %492 = vmatpush3.bf16.msra.mxu0 %v509_v22 }
  0xc6   :  { %v469_v23 = vpop.f32.mrf.mxu1 }
  0xc8   :  { %v94_v24 = vpop.f32.mrf.mxu1 }
  0xca   :  { %v470_v25 = vpop.f32.mrf.mxu1 }
  0xcc   :  { %v97_v26 = vpop.f32.mrf.mxu1 }
  0xce   :  { %v475_v27 = vpop.f32.mrf.mxu1 }
  0xcf   :  { %v165_v30 = vadd.f32 %v475_v27, %v469_v23 }
  0xd0   :  { %v156_v28 = vpop.f32.mrf.mxu1 }
  0xd1   :  { %v157_v29 = vadd.f32 %v156_v28, %v94_v24  ;;  %v180_v38 = vadd.f32 %v429_v32, %v165_v30 }
  0xd2   :  { %v476_v31 = vpop.f32.mrf.mxu1 }
  0xd3   :  { %v168_v33 = vadd.f32 %v476_v31, %v470_v25  ;;  %v178_v37 = vadd.f32 %v429_v32, %v157_v29  ;;  %v184_v43 = vmax.f32 %v180_v38, 0.0 }
  0xd4   :  { %v159_v34 = vpop.f32.mrf.mxu1 }
  0xd5   :  { %v181_v35 = vadd.f32 %v429_v32, %v168_v33  ;;  %v160_v36 = vadd.f32 %v159_v34, %v97_v26  ;;  %v182_v41 = vmax.f32 %v178_v37, 0.0  ;;  %v440_v34 = vld [vmem:[%s684_s8] ss:$0 sm:$0xff] }
  0xd7   :  { %v179_v39 = vadd.f32 %v429_v32, %v160_v36  ;;  %v185_v40 = vmax.f32 %v181_v35, 0.0  ;;  %v439_v32 = vld [vmem:[%s683_s7] ss:$0 sm:$0xff] }
  0xd9   :  { %v183_v42 = vmax.f32 %v179_v39, 0.0  ;;  %v187_v45 = vpack.c.bf16 %v185_v40, %v184_v43 }
  0xdb   :  { %v186_v44 = vpack.c.bf16 %v183_v42, %v182_v41 }
  0xdd   :  { %493 = vmatprep.mubr.bf16.mxu0 %v186_v44 }
  0xde   :  { %494 = vmatmul.mubr.bf16.vlgmr.msra.gmra.mxu0 %v187_v45 }
 0x19e   :  { %v495_v47 = vpop.f32.mrf.mxu0 }
 0x19f   :  { %v302_v48 = vadd.f32 %v495_v47, %v430_v46 }
 0x1a0   :  { %v293_v49 = vpop.f32.mrf.mxu0 }
 0x1a1   :  { %v310_v50 = vmax.f32 %v302_v48, 0.0  ;;  %v294_v51 = vadd.f32 %v430_v46, %v293_v49 }
 0x1a2   :  { %v496_v52 = vpop.f32.mrf.mxu0 }
 0x1a3   :  { %v308_v53 = vmax.f32 %v294_v51, 0.0  ;;  %v305_v54 = vadd.f32 %v496_v52, %v430_v46  ;;  %v319_v55 = vsel %vm312_vm3, %v310_v50, 0.0 }
 0x1a4   :  { %320 = vadd.xlane.f32.xlu1 %v319_v55  ;;  %v296_v56 = vpop.f32.mrf.mxu0 }
 0x1a5   :  { %v311_v57 = vmax.f32 %v305_v54, 0.0  ;;  %v297_v58 = vadd.f32 %v430_v46, %v296_v56  ;;  %v313_v59 = vsel %vm312_vm3, %v308_v53, 0.0 }
 0x1a6   :  { %314 = vadd.xlane.f32.xlu0 %v313_v59 }
 0x1a7   :  { %v309_v60 = vmax.f32 %v297_v58, 0.0  ;;  %v322_v61 = vsel %vm312_vm3, %v311_v57, 0.0 }
 0x1a8   :  { %323 = vadd.xlane.f32.xlu1 %v322_v61 }
 0x1a9   :  { %v316_v62 = vsel %vm312_vm3, %v309_v60, 0.0 }
 0x1aa   :  { %317 = vadd.xlane.f32.xlu0 %v316_v62 }
 0x22d   :  { %v321_v63 = vpop.xlane.xlu1 %320 }
 0x22e   :  { %v327_v0 = vmul.f32 0.03125, %v321_v63 }
 0x22f   :  { %v315_v1 = vpop.xlane.xlu0 %314 }
 0x230   :  { %v325_v2 = vmul.f32 0.03125, %v315_v1  ;;  %v331_v4 = vsub.f32 %v310_v50, %v327_v0 }
 0x231   :  { %v324_v3 = vpop.xlane.xlu1 %323 }
 0x232   :  { %v329_v5 = vsub.f32 %v308_v53, %v325_v2  ;;  %v328_v6 = vmul.f32 0.03125, %v324_v3  ;;  %v335_v13 = vmul.f32 %v331_v4, %v331_v4 }
 0x233   :  { %v318_v7 = vpop.xlane.xlu0 %317 }
 0x234   :  { %v326_v8 = vmul.f32 0.03125, %v318_v7  ;;  %v333_v9 = vmul.f32 %v329_v5, %v329_v5  ;;  %v332_v10 = vsub.f32 %v311_v57, %v328_v6  ;;  %v343_v15 = vsel %vm312_vm3, %v335_v13, 0.0 }
 0x236   :  { %v330_v11 = vsub.f32 %v309_v60, %v326_v8  ;;  %v337_v12 = vsel %vm312_vm3, %v333_v9, 0.0  ;;  %v336_v17 = vmul.f32 %v332_v10, %v332_v10 }
 0x237   :  { %338 = vadd.xlane.f32.xlu0 %v337_v12 }
 0x238   :  { %v334_v14 = vmul.f32 %v330_v11, %v330_v11  ;;  %v346_v18 = vsel %vm312_vm3, %v336_v17, 0.0 }
 0x23a   :  { %v340_v16 = vsel %vm312_vm3, %v334_v14, 0.0 }
 0x23b   :  { %344 = vadd.xlane.f32.xlu0 %v343_v15  ;;  %341 = vadd.xlane.f32.xlu1 %v340_v16 }
 0x23f   :  { %347 = vadd.xlane.f32.xlu1 %v346_v18 }
 0x2c0   :  { %v339_v19 = vpop.xlane.xlu0 %338 }
 0x2c1   :  { %v349_v20 = vmul.f32 0.03125, %v339_v19 }
 0x2c3   :  { %v353_v21 = vadd.f32 1e-05, %v349_v20 }
 0x2c4   :  { %v342_v22 = vpop.xlane.xlu1 %341  ;;  %v345_v23 = vpop.xlane.xlu0 %344 }
 0x2c5   :  { %510 = vrsqrt.f32 %v353_v21  ;;  %v350_v24 = vmul.f32 0.03125, %v342_v22  ;;  %v351_v25 = vmul.f32 0.03125, %v345_v23 }
 0x2c7   :  { %v354_v26 = vadd.f32 1e-05, %v350_v24  ;;  %v355_v27 = vadd.f32 1e-05, %v351_v25 }
 0x2c8   :  { %v348_v28 = vpop.xlane.xlu1 %347 }
 0x2c9   :  { %512 = vrsqrt.f32 %v354_v26  ;;  %v352_v29 = vmul.f32 0.03125, %v348_v28 }
 0x2ca   :  { %514 = vrsqrt.f32 %v355_v27 }
 0x2cb   :  { %v356_v30 = vadd.f32 1e-05, %v352_v29 }
 0x2cd   :  { %516 = vrsqrt.f32 %v356_v30 }
 0x2d2   :  { %v511_v31 = vpop.eup %510 }
 0x2d3   :  { %v361_v33 = vmul.f32 %v511_v31, %v329_v5 }
 0x2d5   :  { %v372_v35 = vmul.f32 %v439_v32, %v361_v33 }
 0x2d6   :  { %v513_v36 = vpop.eup %512 }
 0x2d7   :  { %v515_v37 = vpop.eup %514  ;;  %v383_v38 = vadd.f32 %v440_v34, %v372_v35  ;;  %v362_v39 = vmul.f32 %v513_v36, %v330_v11 }
 0x2d8   :  { %v363_v40 = vmul.f32 %v515_v37, %v331_v4 }
 0x2d9   :  { %v445_v41 = vpack.c.bf16 %v383_v38, %v383_v38  ;;  %v373_v42 = vmul.f32 %v439_v32, %v362_v39 }
 0x2da   :  { %v517_v43 = vpop.eup %516  ;;  %v374_v44 = vmul.f32 %v439_v32, %v363_v40 }
 0x2db   :  { %404 = vst.msk [vmem:[#allocation2] sm:$0xf] %vm403_vm4, %v445_v41  ;;  %v384_v45 = vadd.f32 %v440_v34, %v373_v42  ;;  %v364_v46 = vmul.f32 %v517_v43, %v332_v10 }
 0x2dc   :  { %v385_v47 = vadd.f32 %v440_v34, %v374_v44 }
 0x2dd   :  { %v446_v48 = vpack.c.bf16 %v384_v45, %v384_v45  ;;  %v375_v49 = vmul.f32 %v439_v32, %v364_v46 }
 0x2de   :  { %v447_v50 = vpack.c.bf16 %v385_v47, %v385_v47 }
 0x2df   :  { %405 = vst.msk [vmem:[#allocation2 + $0x4] sm:$0xf] %vm403_vm4, %v446_v48  ;;  %v386_v51 = vadd.f32 %v440_v34, %v375_v49 }
 0x2e0   :  { %406 = vst.msk [vmem:[#allocation2 + $0x8] sm:$0xf] %vm403_vm4, %v447_v50 }
 0x2e1   :  { %v448_v52 = vpack.c.bf16 %v386_v51, %v386_v51 }
 0x2e3   :  { %407 = vst.msk [vmem:[#allocation2 + $0xc] sm:$0xf] %vm403_vm4, %v448_v52 }
 0x2e4   :  { %412 = vsyncadd [#allocation3], 64  ;;  %s540_s7 = smov [#allocation2]  }
 0x2e5   :  { %s413_s8 = sshll.u32 %s540_s7, 4  ;;  %s414_s8 = int_to_ptr.vmem [resolvable:$true] %s413_s8 }
 0x2e6   :  { %s518_s1 = scalar_lea.vmem %s414_s8, 192  ;;  %s522_s24 = scalar_lea.vmem %s414_s8, 256 }
 0x2e7   :  { %p519_p0 = scmp.ne.s32.totalorder %s414_s8, %s518_s1  ;;  %p523_p1 = scmp.lt.s32.totalorder %s414_s8, %s414_s8 }
 0x2e8   :  { %p524_p2 = scmp.lt.s32.totalorder %s522_s24, %s518_s1 }
 0x2ea   :  { %p525_p3 = por %p524_p2, %p523_p1 }
 0x2ec   :  { %p526_p4 = pnand %p525_p3, %p519_p0 }
 0x2ee   :  { %529 = shalt.err (!%p526_p4)
}
 0x2ef   :  { %s541_s25 = smov 64   ;;  %s542_s26 = smov 4  }
 0x2f0   :  { %419 = dma.vmem_to_hbm [thread:$0]  %s414_s8, 192, %s685_s9, [#allocation3], %s541_s25, %s541_s25, %s542_s26  }
 0x2f1   :  { %538 = dma.done.wait [#allocation3], 256  }
 0x2f2   :  { %539 = vsyncadd [#allocation3], 4294967040 }
 0x2f3   :  { %423 = vsyncpa [#allocation3], 1 }

</bundles_post_ra>
